<compile_context>
chip_gen: v7x
topology: tpu7x:2x2x1
jax: 0.10.0
libtpu: 0.0.40
codegen_flags: <defaults>
</compile_context>

<pallas_src>
import functools

import jax
import jax.numpy as jnp
from jax.experimental import pallas as pl
from jax.experimental.pallas import tpu as pltpu


def _round_up(x, m):
    return (x + m - 1) // m * m


def _cba_matmul_kernel(w_ref, p_ref, o_ref, *, batch):
    """Fused conv-as-matmul (BN scale folded into weights) + bias + ReLU.

    w_ref: (Cout_pad, K_pad)     VMEM  BN-scaled weights; bias in the "ones" column
    p_ref: (B, K_pad, N_pad)     VMEM  im2col patches (+ ones row), spatial in lanes
    o_ref: (B, Cout_pad, N_pad)  VMEM
    """
    w = w_ref[...]                                     # (Cout_pad, K_pad)
    for b in range(batch):                             # B is tiny & static: fully unrolled
        y = jnp.dot(w, p_ref[b], preferred_element_type=jnp.float32)
        o_ref[b] = jnp.maximum(y, 0.0).astype(o_ref.dtype)


def cba_forward_nchw(x_nchw, weight_oihw, gamma, beta, running_mean,
                     running_var, *, stride=1, padding=0, eps=1e-5):
    """CBAModule forward.  x_nchw: (B, Cin, H, W).  Returns (B, Cout, Ho, Wo)."""
    b, cin, h, w = x_nchw.shape
    cout, cin_w, kh, kw = weight_oihw.shape
    assert cin == cin_w

    # ---- spatial zero-padding (cheap, stays in the wrapper) ----
    if padding > 0:
        x_p = jnp.pad(x_nchw,
                      ((0, 0), (0, 0), (padding, padding), (padding, padding)))
    else:
        x_p = x_nchw
    hp, wp = h + 2 * padding, w + 2 * padding
    ho = (hp - kh) // stride + 1
    wo = (wp - kw) // stride + 1
    n_sp = ho * wo

    # ---- im2col: layout plumbing done once, outside the kernel ----
    # K-axis order is (cin, kh, kw), matching weight.reshape(Cout, Cin*KH*KW).
    patches = []
    for i in range(kh):
        for j in range(kw):
            sl = jax.lax.slice(
                x_p,
                (0, 0, i, j),
                (b, cin, i + (ho - 1) * stride + 1, j + (wo - 1) * stride + 1),
                (1, 1, stride, stride))                  # (B, Cin, Ho, Wo)
            patches.append(sl)
    pat = jnp.stack(patches, axis=2)                     # (B, Cin, KH*KW, Ho, Wo)
    pat = pat.reshape(b, cin * kh * kw, n_sp).astype(jnp.float32)
    # Extra "ones" row routes the folded BatchNorm bias through the same matmul.
    pat = jnp.concatenate([pat, jnp.ones((b, 1, n_sp), jnp.float32)], axis=1)

    # ---- fold BatchNorm (running stats) into the weights ----
    scale = (gamma / jnp.sqrt(running_var + eps)).astype(jnp.float32)   # (Cout,)
    bias = (beta - running_mean * scale).astype(jnp.float32)            # (Cout,)
    w2d = weight_oihw.reshape(cout, cin * kh * kw).astype(jnp.float32) * scale[:, None]
    w_aug = jnp.concatenate([w2d, bias[:, None]], axis=1)               # (Cout, K+1)

    # ---- pad to TPU-friendly shapes (sublane multiple of 8, lane multiple of 128) ----
    k_tot = cin * kh * kw + 1
    k_pad = _round_up(k_tot, 8)
    cout_pad = _round_up(cout, 8)        # 24 is already a multiple of 8
    n_pad = _round_up(n_sp, 128)         # lane-dense output columns
    w_aug = jnp.pad(w_aug, ((0, cout_pad - cout), (0, k_pad - k_tot)))
    pat = jnp.pad(pat, ((0, 0), (0, k_pad - k_tot), (0, n_pad - n_sp)))

    kernel = functools.partial(_cba_matmul_kernel, batch=b)
    out = pl.pallas_call(
        kernel,
        out_shape=jax.ShapeDtypeStruct((b, cout_pad, n_pad), jnp.float32),
        grid_spec=pltpu.PrefetchScalarGridSpec(
            num_scalar_prefetch=0,
            grid=(1,),
            in_specs=[
                pl.BlockSpec((cout_pad, k_pad), lambda i: (0, 0)),
                pl.BlockSpec((b, k_pad, n_pad), lambda i: (0, 0, 0)),
            ],
            out_specs=pl.BlockSpec((b, cout_pad, n_pad), lambda i: (0, 0, 0)),
        ),
        compiler_params=pltpu.CompilerParams(
            dimension_semantics=("arbitrary",)),
    )(w_aug, pat)

    # Slice off padding and restore (B, Cout, Ho, Wo) — metadata-only reshape.
    out = out[:, :cout, :n_sp].reshape(b, cout, ho, wo)
    return out.astype(x_nchw.dtype)


def _reference_nchw(x_nchw, weight_oihw, gamma, beta, running_mean,
                    running_var, *, stride=1, padding=0, eps=1e-5):
    """Pure-JAX reference for validation."""
    y = jax.lax.conv_general_dilated(
        x_nchw.astype(jnp.float32), weight_oihw.astype(jnp.float32),
        window_strides=(stride, stride),
        padding=[(padding, padding), (padding, padding)],
        dimension_numbers=("NCHW", "OIHW", "NCHW"))
    scale = gamma / jnp.sqrt(running_var + eps)
    bias = beta - running_mean * scale
    y = y * scale[None, :, None, None] + bias[None, :, None, None]
    return jnp.maximum(y, 0.0)


if __name__ == "__main__":
    # CBAModule(in_channels=4) -> out_channels=24, kernel_size=3, stride=1, padding=0
    B, CIN, H, W = 2, 4, 16, 16
    COUT, KH, KW = 24, 3, 3
    STRIDE, PADDING = 1, 0

    key = jax.random.PRNGKey(0)
    k_x, k_w, k_g, k_b, k_m, k_v = jax.random.split(key, 6)

    x = jax.random.normal(k_x, (B, CIN, H, W), dtype=jnp.float32)
    weight = jax.random.normal(k_w, (COUT, CIN, KH, KW), dtype=jnp.float32) * 0.1
    gamma = 1.0 + 0.1 * jax.random.normal(k_g, (COUT,), dtype=jnp.float32)
    beta = 0.1 * jax.random.normal(k_b, (COUT,), dtype=jnp.float32)
    running_mean = 0.1 * jax.random.normal(k_m, (COUT,), dtype=jnp.float32)
    running_var = jnp.abs(jax.random.normal(k_v, (COUT,), dtype=jnp.float32)) + 0.5

    out = cba_forward_nchw(x, weight, gamma, beta, running_mean, running_var,
                           stride=STRIDE, padding=PADDING)
    out = jax.block_until_ready(out)

    ref = _reference_nchw(x, weight, gamma, beta, running_mean, running_var,
                          stride=STRIDE, padding=PADDING)
    assert out.shape == (B, COUT, H - KH + 1, W - KW + 1), out.shape
    assert jnp.allclose(out, ref, atol=1e-4, rtol=1e-4), \
        float(jnp.max(jnp.abs(out - ref)))

    print("KERNEL_OK")
</pallas_src>

<mosaic_0001>
module attributes {stable_mosaic.version = 11 : i64} {
  func.func @_cba_matmul_kernel(%arg0: i32, %arg1: memref<24x40xf32, #tpu.memory_space<vmem>>, %arg2: memref<2x40x256xf32, #tpu.memory_space<vmem>>, %arg3: memref<2x24x256xf32, #tpu.memory_space<vmem>>) attributes {dimension_semantics = [#tpu.dimension_semantics<arbitrary>], iteration_bounds = array<i64: 1>, scalar_prefetch = 0 : i64, scratch_operands = 0 : i64, tpu.core_type = #tpu.core_type<tc>, window_params = [{pipeline_mode = #tpu.pipeline_mode<synchronous>, transform_indices = @transform_0, window_bounds = array<i64: 24, 40>}, {pipeline_mode = #tpu.pipeline_mode<synchronous>, transform_indices = @transform_1, window_bounds = array<i64: 2, 40, 256>}, {pipeline_mode = #tpu.pipeline_mode<synchronous>, transform_indices = @transform_2, window_bounds = array<i64: 2, 24, 256>}]} {
    %c0 = arith.constant 0 : index
    %c0_0 = arith.constant 0 : index
    %0 = vector.load %arg1[%c0, %c0_0] : memref<24x40xf32, #tpu.memory_space<vmem>>, vector<24x40xf32>
    %c0_1 = arith.constant 0 : index
    %c0_2 = arith.constant 0 : index
    %c0_3 = arith.constant 0 : index
    %1 = vector.load %arg2[%c0_1, %c0_2, %c0_3] : memref<2x40x256xf32, #tpu.memory_space<vmem>>, vector<1x40x256xf32>
    %2 = vector.shape_cast %1 : vector<1x40x256xf32> to vector<40x256xf32>
    %cst = arith.constant dense<0.000000e+00> : vector<24x256xf32>
    %3 = tpu.matmul %0, %2, %cst {dimension_numbers = #tpu.dot_dimension_numbers<[1], [0], [0], [1], [0, 0, 1, 1], [], []>} : vector<24x40xf32>, vector<40x256xf32>, vector<24x256xf32> -> vector<24x256xf32>
    %cst_4 = arith.constant 0.000000e+00 : f32
    %4 = vector.broadcast %cst_4 : f32 to vector<24x256xf32>
    %5 = arith.maximumf %3, %4 : vector<24x256xf32>
    %c0_5 = arith.constant 0 : index
    %c0_6 = arith.constant 0 : index
    %c0_7 = arith.constant 0 : index
    %6 = vector.load %arg3[%c0_5, %c0_6, %c0_7] : memref<2x24x256xf32, #tpu.memory_space<vmem>>, vector<1x24x256xf32>
    %7 = vector.shape_cast %6 : vector<1x24x256xf32> to vector<24x256xf32>
    %8 = vector.shape_cast %5 : vector<24x256xf32> to vector<1x24x256xf32>
    tpu.vector_store %arg3[%c0_5, %c0_6, %c0_7], %8 {strides = array<i32>} : memref<2x24x256xf32, #tpu.memory_space<vmem>>, vector<1x24x256xf32>,
    %c1 = arith.constant 1 : index
    %c0_8 = arith.constant 0 : index
    %c0_9 = arith.constant 0 : index
    %9 = vector.load %arg2[%c1, %c0_8, %c0_9] : memref<2x40x256xf32, #tpu.memory_space<vmem>>, vector<1x40x256xf32>
    %10 = vector.shape_cast %9 : vector<1x40x256xf32> to vector<40x256xf32>
    %cst_10 = arith.constant dense<0.000000e+00> : vector<24x256xf32>
    %11 = tpu.matmul %0, %10, %cst_10 {dimension_numbers = #tpu.dot_dimension_numbers<[1], [0], [0], [1], [0, 0, 1, 1], [], []>} : vector<24x40xf32>, vector<40x256xf32>, vector<24x256xf32> -> vector<24x256xf32>
    %cst_11 = arith.constant 0.000000e+00 : f32
    %12 = vector.broadcast %cst_11 : f32 to vector<24x256xf32>
    %13 = arith.maximumf %11, %12 : vector<24x256xf32>
    %c1_12 = arith.constant 1 : index
    %c0_13 = arith.constant 0 : index
    %c0_14 = arith.constant 0 : index
    %14 = vector.load %arg3[%c1_12, %c0_13, %c0_14] : memref<2x24x256xf32, #tpu.memory_space<vmem>>, vector<1x24x256xf32>
    %15 = vector.shape_cast %14 : vector<1x24x256xf32> to vector<24x256xf32>
    %16 = vector.shape_cast %13 : vector<24x256xf32> to vector<1x24x256xf32>
    tpu.vector_store %arg3[%c1_12, %c0_13, %c0_14], %16 {strides = array<i32>} : memref<2x24x256xf32, #tpu.memory_space<vmem>>, vector<1x24x256xf32>,
    return
  }
  func.func @transform_0(%arg0: i32) -> (i32, i32) {
    %c0_i32 = arith.constant 0 : i32
    %c0_i32_0 = arith.constant 0 : i32
    %c0_i32_1 = arith.constant 0 : i32
    return %c0_i32, %c0_i32_0 : i32, i32
  }
  func.func @transform_1(%arg0: i32) -> (i32, i32, i32) {
    %c0_i32 = arith.constant 0 : i32
    %c0_i32_0 = arith.constant 0 : i32
    %c0_i32_1 = arith.constant 0 : i32
    %c0_i32_2 = arith.constant 0 : i32
    return %c0_i32, %c0_i32_0, %c0_i32_1 : i32, i32, i32
  }
  func.func @transform_2(%arg0: i32) -> (i32, i32, i32) {
    %c0_i32 = arith.constant 0 : i32
    %c0_i32_0 = arith.constant 0 : i32
    %c0_i32_1 = arith.constant 0 : i32
    %c0_i32_2 = arith.constant 0 : i32
    return %c0_i32, %c0_i32_0, %c0_i32_1 : i32, i32, i32
  }
}

</mosaic_0001>

<bundles_post_ra>
// kernel: tpu_custom_call.1
= control target key start
LH: loop header
LB: loop body
LE: loop exit
PB: predicated region body
PF: predicated region fallthrough
CT: control target
= control target key end

     0   :  { %7 = vsyncpa [#allocation3], 0  ;;  %s450_s0 = inlined_call_operand.hbm [shape: f32[24,40], index: 0, kind: input, shape index: {}]   ;;  %s451_s1 = inlined_call_operand.hbm [shape: f32[2,40,256], index: 1, kind: input, shape index: {}]   ;;  %s452_s2 = inlined_call_operand.hbm [shape: f32[2,24,256], index: 2, kind: output, shape index: {}]  }
   0x1   :  { %8 = vsyncpa [#allocation6], 0 }
   0x2   :  { %9 = vsyncpa [#allocation4], 0  ;;  %s385_s9 = smov [#allocation2]   ;;  %s313_s13 = scalar_lea.hbm %s450_s0, 384 }
   0x3   :  { %s15_s10 = sshll.u32 %s385_s9, 4  ;;  %p314_p0 = scmp.ne.s32.totalorder %s450_s0, %s313_s13  ;;  %s16_s10 = int_to_ptr.vmem [resolvable:$true] %s15_s10 }
   0x4   :  { %p317_p1 = scmp.lt.u32.totalorder %s313_s13, %s450_s0 }
   0x6   :  { %p319_p2 = pnand %p317_p1, %p314_p0 }
   0x8   :  { %322 = shalt.err (!%p319_p2)
}
   0x9   :  { %s323_s18 = scalar_lea.vmem %s16_s10, 384  ;;  %p328_p4 = scmp.lt.s32.totalorder %s16_s10, %s16_s10 }
   0xa   :  { %p324_p3 = scmp.ne.s32.totalorder %s16_s10, %s323_s18  ;;  %p329_p5 = scmp.lt.s32.totalorder %s323_s18, %s323_s18 }
   0xc   :  { %p330_p6 = por %p329_p5, %p328_p4 }
   0xe   :  { %p331_p7 = pnand %p330_p6, %p324_p3 }
  0x10   :  { %334 = shalt.err (!%p331_p7)
}
  0x11   :  { %s386_s19 = smov 128   ;;  %s387_s20 = smov 8  }
  0x12   :  { %21 = dma.hbm_to_vmem [thread:$0]  %s450_s0, 384, %s16_s10, [#allocation3], %s386_s19, %s386_s19, %s387_s20  }
  0x13   :  { %s388_s23 = smov [#allocation5]   ;;  %s335_s27 = scalar_lea.hbm %s451_s1, 2560 }
  0x14   :  { %s27_s24 = sshll.u32 %s388_s23, 4  ;;  %p336_p8 = scmp.ne.s32.totalorder %s451_s1, %s335_s27  ;;  %s28_s24 = int_to_ptr.vmem [resolvable:$true] %s27_s24 }
  0x15   :  { %p339_p9 = scmp.lt.u32.totalorder %s335_s27, %s451_s1 }
  0x17   :  { %p341_p10 = pnand %p339_p9, %p336_p8 }
  0x19   :  { %344 = shalt.err (!%p341_p10)
}
  0x1a   :  { %s345_s4 = scalar_lea.vmem %s28_s24, 2560  ;;  %p350_p12 = scmp.lt.s32.totalorder %s28_s24, %s28_s24 }
  0x1b   :  { %p346_p11 = scmp.ne.s32.totalorder %s28_s24, %s345_s4  ;;  %p351_p13 = scmp.lt.s32.totalorder %s345_s4, %s345_s4 }
  0x1d   :  { %p352_p0 = por %p351_p13, %p350_p12 }
  0x1f   :  { %p353_p1 = pnand %p352_p0, %p346_p11 }
  0x21   :  { %356 = shalt.err (!%p353_p1)
}
  0x22   :  { %s389_s0 = smov 256   ;;  %s390_s5 = smov 16  }
  0x23   :  { %33 = dma.hbm_to_vmem [thread:$0]  %s451_s1, 2560, %s28_s24, [#allocation6], %s389_s0, %s389_s0, %s390_s5  }
  0x24   :  { %379 = dma.done.wait [#allocation3], 384  }
  0x25   :  { %380 = vsyncadd [#allocation3], 4294966912 }
  0x26   :  { %381 = dma.done.wait [#allocation6], 2560  }
  0x27   :  { %382 = vsyncadd [#allocation6], 4294964736  ;;  %v391_v0 = vmov 0.0   ;;  %v44_v1 = vld [vmem:[#allocation5 + $0x8] sm:$0xff]  ;;  %v46_v2 = vld [vmem:[#allocation5 + $0x18] sm:$0xff]  ;;  %vm53_vm0 = vcmask 326656  }
  0x28   :  { %127 = vmatprep.mubr.f32.mxu0 %v391_v0  ;;  %233 = vmatprep.mubr.f32.mxu1 %v391_v0  ;;  %v160_v3 = vld [vmem:[#allocation5 + $0x58] sm:$0xff]  ;;  %v289_v4 = vpack.c.bf16 %v46_v2, %v44_v1  ;;  %v162_v5 = vld [vmem:[#allocation5 + $0x68] sm:$0xff]  ;;  %v43_v6 = vld [vmem:[#allocation5] sm:$0xff]  ;;  %s392_s1 = smov [#allocation7]  }
  0x29   :  { %v45_v7 = vld [vmem:[#allocation5 + $0x10] sm:$0xff]  ;;  %v297_v8 = vpack.c.bf16 %v162_v5, %v160_v3  ;;  %v161_v11 = vld [vmem:[#allocation5 + $0x60] sm:$0xff]  ;;  %v48_v12 = vld [vmem:[#allocation5 + $0x28] sm:$0xff]  ;;  %s270_s8 = sshll.u32 %s392_s1, 4  ;;  %s271_s8 = int_to_ptr.vmem [resolvable:$true] %s270_s8 }
  0x2a   :  { %v291_v9 = vpack.c.bf16 %v45_v7, %v43_v6  ;;  %v159_v10 = vld [vmem:[#allocation5 + $0x50] sm:$0xff]  ;;  %290 = vmatprep.subr.bf16.mxu0 %v289_v4  ;;  %v50_v14 = vld [vmem:[#allocation5 + $0x38] sm:$0xff]  ;;  %v166_v16 = vld [vmem:[#allocation5 + $0x88] sm:$0xff]  ;;  %s357_s9 = scalar_lea.vmem %s271_s8, 1536  ;;  %p362_p3 = scmp.lt.s32.totalorder %s271_s8, %s271_s8 }
  0x2b   :  { %v299_v13 = vpack.c.bf16 %v161_v11, %v159_v10  ;;  %v164_v15 = vld [vmem:[#allocation5 + $0x78] sm:$0xff]  ;;  %298 = vmatprep.subr.bf16.mxu1 %v297_v8  ;;  %v293_v17 = vpack.c.bf16 %v50_v14, %v48_v12  ;;  %v47_v19 = vld [vmem:[#allocation5 + $0x20] sm:$0xff]  ;;  %v49_v20 = vld [vmem:[#allocation5 + $0x30] sm:$0xff]  ;;  %p358_p2 = scmp.ne.s32.totalorder %s271_s8, %s357_s9  ;;  %p363_p4 = scmp.lt.s32.totalorder %s357_s9, %s357_s9 }
  0x2c   :  { %292 = vmatpush1.bf16.msra.mxu0 %v291_v9  ;;  %v301_v18 = vpack.c.bf16 %v166_v16, %v164_v15  ;;  %v163_v21 = vld [vmem:[#allocation5 + $0x70] sm:$0xff]  ;;  %v295_v22 = vpack.c.bf16 %v49_v20, %v47_v19  ;;  %v165_v23 = vld [vmem:[#allocation5 + $0x80] sm:$0xff]  ;;  %v52_v25 = vld [vmem:[#allocation5 + $0x48] sm:$0xff] }
  0x2d   :  { %300 = vmatpush1.bf16.msra.mxu1 %v299_v13  ;;  %294 = vmatprep.subr.bf16.mxu0 %v293_v17  ;;  %v303_v24 = vpack.c.bf16 %v165_v23, %v163_v21  ;;  %v168_v26 = vld [vmem:[#allocation5 + $0x98] sm:$0xff]  ;;  %v51_v27 = vld [vmem:[#allocation5 + $0x40] sm:$0xff]  ;;  %v167_v28 = vld [vmem:[#allocation5 + $0x90] sm:$0xff]  ;;  %p364_p5 = por %p363_p4, %p362_p3 }
  0x2e   :  { %302 = vmatprep.subr.bf16.mxu1 %v301_v18  ;;  %v40_v29 = vld [vmem:[#allocation2] sm:$0xff]  ;;  %v41_v30 = vld [vmem:[#allocation2 + $0x8] sm:$0xff]  ;;  %v42_v31 = vld [vmem:[#allocation2 + $0x10] sm:$0xff] }
  0x2f   :  { %p365_p6 = pnand %p364_p5, %p358_p2 }
  0x30   :  { %296 = vmatpush1.bf16.msra.mxu0 %v295_v22 }
  0x31   :  { %304 = vmatpush1.bf16.msra.mxu1 %v303_v24  ;;  %71 = vmatprep.subr.mxu0 %v52_v25 }
  0x32   :  { %177 = vmatprep.subr.mxu1 %v168_v26 }
  0x34   :  { %72 = vmatpush1.msra.mxu0 %v51_v27 }
  0x35   :  { %178 = vmatpush1.msra.mxu1 %v167_v28  ;;  %283 = vmatmul.mubr.msk.f32.vlgmr.msra.gmra.mrb[0].mxu0 %vm53_vm0, %v40_v29 }
  0x36   :  { %286 = vmatmul.mubr.msk.f32.vlgmr.msra.gmra.mrb[0].mxu1 %vm53_vm0, %v40_v29  ;;  %133 = vmatprep.mubr.f32.mxu0 %v391_v0 }
  0x37   :  { %239 = vmatprep.mubr.f32.mxu1 %v391_v0 }
  0x39   :  { %284 = vmatmul.mubr.msk.f32.gmra.mrb[2].mxu0 %vm53_vm0, %v41_v30 }
  0x3a   :  { %287 = vmatmul.mubr.msk.f32.gmra.mrb[2].mxu1 %vm53_vm0, %v41_v30  ;;  %139 = vmatprep.mubr.f32.mxu0 %v391_v0 }
  0x3b   :  { %245 = vmatprep.mubr.f32.mxu1 %v391_v0 }
  0x3d   :  { %285 = vmatmul.mubr.msk.f32.gmra.mrb[4].mxu0 %vm53_vm0, %v42_v31 }
  0x3e   :  { %288 = vmatmul.mubr.msk.f32.gmra.mrb[4].mxu1 %vm53_vm0, %v42_v31 }
 0x108   :  { %v129_v32 = vpop.f32.mrb[0].mxu0 }
 0x109   :  { %v146_v33 = vmax.f32 %v129_v32, 0.0  ;;  %v235_v34 = vpop.f32.mrb[0].mxu1  ;;  %v131_v35 = vpop.f32.mrb[1].mxu0 }
 0x10a   :  { %v252_v36 = vmax.f32 %v235_v34, 0.0  ;;  %v147_v37 = vmax.f32 %v131_v35, 0.0  ;;  %v237_v38 = vpop.f32.mrb[1].mxu1 }
 0x10b   :  { %152 = vst [vmem:[#allocation7] sm:$0xff] %v146_v33  ;;  %v253_v39 = vmax.f32 %v237_v38, 0.0 }
 0x10c   :  { %259 = vst [vmem:[#allocation7 + $0x30] sm:$0xff] %v252_v36  ;;  %153 = vst [vmem:[#allocation7 + $0x8] sm:$0xff] %v147_v37  ;;  %v135_v40 = vpop.f32.mrb[2].mxu0 }
 0x10d   :  { %260 = vst [vmem:[#allocation7 + $0x38] sm:$0xff] %v253_v39  ;;  %v148_v41 = vmax.f32 %v135_v40, 0.0  ;;  %v241_v42 = vpop.f32.mrb[2].mxu1  ;;  %v137_v43 = vpop.f32.mrb[3].mxu0 }
 0x10e   :  { %v254_v44 = vmax.f32 %v241_v42, 0.0  ;;  %v149_v45 = vmax.f32 %v137_v43, 0.0  ;;  %v243_v46 = vpop.f32.mrb[3].mxu1 }
 0x10f   :  { %154 = vst [vmem:[#allocation7 + $0x10] sm:$0xff] %v148_v41  ;;  %v255_v47 = vmax.f32 %v243_v46, 0.0 }
 0x110   :  { %261 = vst [vmem:[#allocation7 + $0x40] sm:$0xff] %v254_v44  ;;  %155 = vst [vmem:[#allocation7 + $0x18] sm:$0xff] %v149_v45  ;;  %v141_v48 = vpop.f32.mrb[4].mxu0 }
 0x111   :  { %262 = vst [vmem:[#allocation7 + $0x48] sm:$0xff] %v255_v47  ;;  %v150_v49 = vmax.f32 %v141_v48, 0.0  ;;  %v247_v50 = vpop.f32.mrb[4].mxu1  ;;  %v143_v51 = vpop.f32.mrb[5].mxu0 }
 0x112   :  { %v256_v52 = vmax.f32 %v247_v50, 0.0  ;;  %v151_v53 = vmax.f32 %v143_v51, 0.0  ;;  %v249_v54 = vpop.f32.mrb[5].mxu1 }
 0x113   :  { %156 = vst [vmem:[#allocation7 + $0x20] sm:$0xff] %v150_v49  ;;  %v257_v55 = vmax.f32 %v249_v54, 0.0 }
 0x114   :  { %263 = vst [vmem:[#allocation7 + $0x50] sm:$0xff] %v256_v52  ;;  %157 = vst [vmem:[#allocation7 + $0x28] sm:$0xff] %v151_v53 }
 0x115   :  { %264 = vst [vmem:[#allocation7 + $0x58] sm:$0xff] %v257_v55 }
 0x116   :  { %368 = shalt.err (!%p365_p6)
}
 0x117   :  { %s369_s12 = scalar_lea.hbm %s452_s2, 1536 }
 0x118   :  { %p370_p7 = scmp.ne.s32.totalorder %s452_s2, %s369_s12  ;;  %p373_p8 = scmp.lt.u32.totalorder %s369_s12, %s452_s2 }
 0x11a   :  { %p375_p9 = pnand %p373_p8, %p370_p7 }
 0x11c   :  { %378 = shalt.err (!%p375_p9)
}
 0x11d   :  { %276 = dma.vmem_to_hbm [thread:$0]  %s271_s8, 1536, %s452_s2, [#allocation4], %s389_s0, %s389_s0, %s390_s5  }
 0x11e   :  { %383 = dma.done.wait [#allocation4], 1536  }
 0x11f   :  { %384 = vsyncadd [#allocation4], 4294965760 }
 0x120   :  { %280 = vsyncpa [#allocation3], 1 }
 0x121   :  { %281 = vsyncpa [#allocation6], 1 }
 0x122   :  { %282 = vsyncpa [#allocation4], 1 }

</bundles_post_ra>
